<compile_context>
chip_gen: v7x
topology: tpu7x:2x2x1
jax: 0.10.0
libtpu: 0.0.40
codegen_flags: <defaults>
</compile_context>

<pallas_src>
import functools

import jax
import jax.numpy as jnp
from jax.experimental import pallas as pl
from jax.experimental.pallas import tpu as pltpu


def _cyclic_shift_kernel(x_ref, o_ref, *, shift_rows, shift_lanes):
    # Block: (B_TILE, H, W*C).  Axis 1 = H (sublane axis), axis 2 = W*C (lane
    # axis).  Both rolls run on the XLU and feed straight into the store, so
    # no block-sized scratch ref is materialised.
    x = x_ref[...]
    if shift_rows:
        x = pltpu.roll(x, shift_rows, 1)
    if shift_lanes:
        x = pltpu.roll(x, shift_lanes, 2)
    o_ref[...] = x


def _pick_batch_tile(b, per_image_bytes, target_bytes=2 << 20):
    """Largest divisor of b whose block is <= ~target_bytes, with grid >= 2."""
    bt = max(1, min(b, target_bytes // max(per_image_bytes, 1)))
    # Keep at least 2 grid steps when possible so v7x's two TensorCores both
    # get work (harmless no-op on v5e / v6e).
    if bt >= b and b >= 2:
        bt = b // 2
    # Prefer a divisor of b so no block is ragged.
    while b % bt != 0:
        bt -= 1
    return bt


@functools.partial(jax.jit, static_argnames=("displacement",))
def cyclic_shift(x, displacement):
    """torch.roll(x, shifts=(displacement, displacement), dims=(1, 2)) for NHWC x."""
    b, h, w, c = x.shape
    dsize = jnp.dtype(x.dtype).itemsize

    # Normalize to non-negative static shifts (same semantics as torch/jnp roll).
    shift_rows = displacement % h
    # Rolling dim 2 (w) by d == rolling the flattened (w*c) lane axis by d*c,
    # since each w step is a contiguous run of c lanes.
    shift_lanes = (displacement % w) * c

    # Lane-dense invariant: only take the merged-(w*c) Pallas path when the
    # merged lane axis is a multiple of 128 (true for all standard Swin
    # stages).  Otherwise fall back to plain XLA roll rather than risk masked
    # stores / unverified wraparound on a non-lane-aligned width.
    if (w * c) % 128 != 0:
        # TODO(synk): add a padded-C Pallas path for non-Swin shapes.
        return jnp.roll(x, shift=(displacement, displacement), axis=(1, 2))

    per_image_bytes = h * w * c * dsize
    bt = _pick_batch_tile(b, per_image_bytes)
    block_bytes = bt * per_image_bytes

    # (in + out) x 2 double buffers + roll temporaries ~= 6x block bytes.
    vmem_limit = int(min(64 << 20, max(6 * block_bytes + (1 << 20), 16 << 20)))

    x2 = x.reshape(b, h, w * c)  # contiguous merge -> lane-dense last dim

    out = pl.pallas_call(
        functools.partial(
            _cyclic_shift_kernel,
            shift_rows=shift_rows,
            shift_lanes=shift_lanes,
        ),
        grid=(b // bt,),
        in_specs=[pl.BlockSpec((bt, h, w * c), lambda i: (i, 0, 0))],
        out_specs=pl.BlockSpec((bt, h, w * c), lambda i: (i, 0, 0)),
        out_shape=jax.ShapeDtypeStruct((b, h, w * c), x.dtype),
        input_output_aliases={0: 0},
        cost_estimate=pl.CostEstimate(
            flops=0,
            transcendentals=0,
            bytes_accessed=2 * b * h * w * c * dsize,
        ),
        compiler_params=pltpu.CompilerParams(
            dimension_semantics=("parallel",),
            vmem_limit_bytes=vmem_limit,
        ),
    )(x2)
    return out.reshape(b, h, w, c)


if __name__ == "__main__":
    key = jax.random.PRNGKey(0)
    # Shape CyclicShift sees inside a Swin stage: (b, h', w', hidden), NHWC.
    b, h, w, c = 4, 8, 8, 32
    window_size = 4

    ok = True
    for dtype in (jnp.float32, jnp.bfloat16):
        x = jax.random.normal(key, (b, h, w, c), dtype=jnp.float32).astype(dtype)
        # Swin uses both CyclicShift(-ws//2) (before attn) and CyclicShift(+ws//2) (after).
        for disp in (-(window_size // 2), window_size // 2):
            out = cyclic_shift(x, disp)
            jax.block_until_ready(out)
            ref = jnp.roll(x, shift=(disp, disp), axis=(1, 2))
            ok &= out.shape == x.shape and out.dtype == x.dtype
            ok &= bool(jnp.array_equal(out, ref))
    assert ok
    print("KERNEL_OK")
</pallas_src>

<mosaic_0001>
module attributes {stable_mosaic.version = 11 : i64} {
  func.func @_cyclic_shift_kernel(%arg0: i32, %arg1: memref<2x8x256xf32, #tpu.memory_space<vmem>>, %arg2: memref<2x8x256xf32, #tpu.memory_space<vmem>>) attributes {dimension_semantics = [#tpu.dimension_semantics<parallel>], iteration_bounds = array<i64: 2>, scalar_prefetch = 0 : i64, scratch_operands = 0 : i64, tpu.core_type = #tpu.core_type<tc>, window_params = [{transform_indices = @transform_0, window_bounds = array<i64: 2, 8, 256>}, {transform_indices = @transform_1, window_bounds = array<i64: 2, 8, 256>}]} {
    %c0 = arith.constant 0 : index
    %c0_0 = arith.constant 0 : index
    %c0_1 = arith.constant 0 : index
    %0 = vector.load %arg1[%c0, %c0_0, %c0_1] : memref<2x8x256xf32, #tpu.memory_space<vmem>>, vector<2x8x256xf32>
    %c6_i32 = arith.constant 6 : i32
    %1 = tpu.dynamic_rotate %0 by %c6_i32 dim 1 : vector<2x8x256xf32>, i32 -> vector<2x8x256xf32>
    %c192_i32 = arith.constant 192 : i32
    %2 = tpu.dynamic_rotate %1 by %c192_i32 dim 2 : vector<2x8x256xf32>, i32 -> vector<2x8x256xf32>
    %c0_2 = arith.constant 0 : index
    %c0_3 = arith.constant 0 : index
    %c0_4 = arith.constant 0 : index
    %3 = vector.load %arg2[%c0_2, %c0_3, %c0_4] : memref<2x8x256xf32, #tpu.memory_space<vmem>>, vector<2x8x256xf32>
    tpu.vector_store %arg2[%c0_2, %c0_3, %c0_4], %2 {strides = array<i32>} : memref<2x8x256xf32, #tpu.memory_space<vmem>>, vector<2x8x256xf32>,
    return
  }
  func.func @transform_0(%arg0: i32) -> (i32, i32, i32) {
    %c0_i32 = arith.constant 0 : i32
    %c0_i32_0 = arith.constant 0 : i32
    %c0_i32_1 = arith.constant 0 : i32
    return %arg0, %c0_i32, %c0_i32_0 : i32, i32, i32
  }
  func.func @transform_1(%arg0: i32) -> (i32, i32, i32) {
    %c0_i32 = arith.constant 0 : i32
    %c0_i32_0 = arith.constant 0 : i32
    %c0_i32_1 = arith.constant 0 : i32
    return %arg0, %c0_i32, %c0_i32_0 : i32, i32, i32
  }
}

</mosaic_0001>

<bundles_post_ra>
// kernel: cyclic_shift.1
= control target key start
LH: loop header
LB: loop body
LE: loop exit
PB: predicated region body
PF: predicated region fallthrough
CT: control target
= control target key end

     0   :  { %s253_s6 = smov 0   ;;  %s270_s0 = inlined_call_operand.vmem [shape: f32[4,8,256], index: 0, kind: input, shape index: {}, may-alias: {0,1}]   ;;  %s271_s1 = inlined_call_operand.vmem [shape: f32[4,8,256], index: 1, kind: output, shape index: {}, may-alias: {0,1}]  }
   0x1 LB: > { %s210_s7 = sadd.s32 4294967295, %s240_s6   ;;  %p214_p0 = scmp.ge.s32.totalorder %s240_s6, 1  ;;  %s240_s6 = sphi %s253_s6, %s11_s6  }
   0x2   : > { %p89_p1 = scmp.lt.s32.totalorder %s240_s6, 3 }
   0x4   : > { %p90_p2 = pnand %p214_p0, %p89_p1 }
   0x5   : > { %s215_s8 = sshll.u32 (!%p90_p2), %s210_s7, 1  ;;  %s242_s13 = smov (!%p90_p2), 64   ;;  %v141_v8 = vlaneseq (!%p90_p2) }
   0x6   : > { %93 = sbr.rel (%p90_p2) target bundleno = 141 (0x8d), region = 24  ;;  %p112_p3 = scmp.lt.s32.totalorder (!%p90_p2), %s215_s8, 3 }
   0x7   : > { %v142_v9 = vand.u32 (!%p90_p2), 127, %v141_v8 }
   0x9   : > { %vm143_vm0 = vcmp.lt.s32.totalorder (!%p90_p2), %v142_v9, 64 }
   0xd   : > { %s273_s8 = smov (!%p112_p3, %s215_s8), 3 }
   0xe   : > { %s223_s9 = sshll.u32 %s273_s8, 4 }
   0xf   : > { %s116_s12 = scalar_lea.vmem %s270_s0, %s223_s9  ;;  %s123_s16 = scalar_lea.vmem %s271_s1, %s223_s9 }
  0x10   : > { %v127_v0 = vld [vmem:[%s116_s12 + $0x10] sm:$0xff]  ;;  %v125_v1 = vld [vmem:[%s116_s12] sm:$0xff]  ;;  %v128_v2 = vld [vmem:[%s116_s12 + $0x18] sm:$0xff] }
  0x11   : > { %v131_v3 = vrot.slane %v127_v0, 2  ;;  %v129_v4 = vrot.slane %v125_v1, 2  ;;  %v126_v5 = vld [vmem:[%s116_s12 + $0x8] sm:$0xff]  ;;  %v132_v6 = vrot.slane %v128_v2, 2 }
  0x12   : > { %v130_v7 = vrot.slane %v126_v5, 2 }
  0x13   : > { %135 = vrot.lane.b32.xlu1 %v131_v3, %s242_s13  ;;  %133 = vrot.lane.b32.xlu0 %v129_v4, %s242_s13 }
  0x17   : > { %139 = vrot.lane.b32.xlu1 %v132_v6, %s242_s13  ;;  %137 = vrot.lane.b32.xlu0 %v130_v7, %s242_s13 }
  0x85   : > { %v136_v10 = vpop.permute.xlu1 %135  ;;  %v134_v11 = vpop.permute.xlu0 %133 }
  0x89   : > { %v140_v12 = vpop.permute.xlu1 %139  ;;  %v138_v13 = vpop.permute.xlu0 %137 }
  0x8a   : > { %v145_v14 = vsel %vm143_vm0, %v136_v10, %v140_v12  ;;  %v147_v15 = vsel %vm143_vm0, %v140_v12, %v136_v10  ;;  %v144_v16 = vsel %vm143_vm0, %v134_v11, %v138_v13  ;;  %v146_v17 = vsel %vm143_vm0, %v138_v13, %v134_v11 }
  0x8b   : > { %148 = vst [vmem:[%s123_s16] sm:$0xff] %v144_v16  ;;  %149 = vst [vmem:[%s123_s16 + $0x8] sm:$0xff] %v146_v17 }
  0x8c   : > { %150 = vst [vmem:[%s123_s16 + $0x10] sm:$0xff] %v145_v14  ;;  %151 = vst [vmem:[%s123_s16 + $0x18] sm:$0xff] %v147_v15 }
  0x8d PF: > { %s11_s6 = sadd.s32 1, %s240_s6  }
  0x8e   : > { %p8_p4 = scmp.ge.s32.totalorder %s11_s6, 4  }
  0x90   :  { %10 = sbr.rel (!%p8_p4) target bundleno = 1 (0x1), region = 54 }

</bundles_post_ra>
